<compile_context>
chip_gen: v7x
topology: tpu7x:2x2x1
jax: 0.10.0
libtpu: 0.0.40
codegen_flags: <defaults>
</compile_context>

<pallas_src>
import functools

import jax
import jax.numpy as jnp
from jax.experimental import pallas as pl
from jax.experimental.pallas import tpu as pltpu


def _cdiv(a, b):
    return -(-a // b)


@functools.lru_cache(maxsize=1)
def _vmem_capacity_bytes():
    try:
        return int(pltpu.get_tpu_info().vmem_capacity_bytes)
    except Exception:
        return 64 << 20  # conservative (v7x-sized) fallback


def _pick_tile_n(N, C, in_itemsize, B, vmem_cap_bytes, min_total_steps=8):
    """Tile size along the points axis (multiple of 128).

    Targets a 4-8 MiB input tile (bigger tile -> closer to HBM roofline) but
    caps it so the grid has at least ~min_total_steps steps, keeping the
    double-buffered pipeline busy and both v7x TensorCores fed.
    """
    target_tile_bytes = (8 << 20) if vmem_cap_bytes >= (96 << 20) else (4 << 20)
    tn = (target_tile_bytes // max(C * in_itemsize, 1)) // 128 * 128
    tn = max(128, tn)
    n_ceil = _cdiv(N, 128) * 128
    tn = min(tn, n_ceil)
    # Guarantee enough grid steps: B * n_tiles >= min_total_steps.
    tiles_per_batch = _cdiv(min_total_steps, max(B, 1))
    tn_cap = _cdiv(_cdiv(N, tiles_per_batch), 128) * 128
    tn = min(tn, max(128, tn_cap))
    return int(tn)


def _graspable_kernel(x_ref, w_ref, b_ref, out_ref):
    # x_ref   : (1, C, TN)  one batch element, TN points (compute dtype)
    # w_ref   : (3, C)      conv weight, kernel-size-1 squeezed (compute dtype)
    # b_ref   : (3, TN)     bias pre-broadcast to lane-dense f32 block
    # out_ref : (1, 3, TN)  fused graspable score block (input dtype)
    x = x_ref[0]                                                   # (C, TN)
    w = w_ref[...]                                                 # (3, C)
    acc = jnp.dot(w, x, preferred_element_type=jnp.float32)       # (3, TN) f32
    out_ref[0] = (acc + b_ref[...]).astype(out_ref.dtype)


@functools.partial(jax.jit, static_argnames=("compute_dtype",))
def _graspable_scores_pallas(seed_features, w2d, bias, *, compute_dtype):
    B, C, N = seed_features.shape
    out_dtype = seed_features.dtype
    out_bytes = jnp.dtype(out_dtype).itemsize
    cdt = jnp.dtype(compute_dtype)
    cbytes = cdt.itemsize

    vmem_cap = _vmem_capacity_bytes()
    TN = _pick_tile_n(N, C, cbytes, B, vmem_cap)
    n_tiles = _cdiv(N, TN)  # ragged last tile handled by Pallas (no host pad)

    # Cast the streamed input / weight at the boundary (fuses into the
    # producing op under a larger jit); accumulation stays f32 in-kernel.
    x = seed_features.astype(cdt)
    w = w2d.astype(cdt)
    b_tile = jnp.broadcast_to(bias.astype(jnp.float32).reshape(3, 1), (3, TN))

    in_tile_bytes = C * TN * cbytes
    out_tile_bytes = 3 * TN * out_bytes
    const_bytes = 3 * C * cbytes + 3 * TN * 4
    needed = 2 * (in_tile_bytes + out_tile_bytes) + const_bytes + (1 << 20)
    vmem_limit = int(min(max(2 * needed, 16 << 20), max(vmem_cap // 2, 16 << 20)))

    cost = pl.CostEstimate(
        flops=2 * B * 3 * C * N,
        transcendentals=0,
        bytes_accessed=B * C * N * cbytes + B * 3 * N * out_bytes
        + 3 * C * cbytes + 3 * TN * 4,
    )

    out = pl.pallas_call(
        _graspable_kernel,
        out_shape=jax.ShapeDtypeStruct((B, 3, N), out_dtype),
        grid_spec=pltpu.PrefetchScalarGridSpec(
            num_scalar_prefetch=0,
            grid=(B, n_tiles),
            in_specs=[
                pl.BlockSpec((1, C, TN), lambda b, n: (b, 0, n)),
                pl.BlockSpec((3, C), lambda b, n: (0, 0)),
                pl.BlockSpec((3, TN), lambda b, n: (0, 0)),
            ],
            out_specs=pl.BlockSpec((1, 3, TN), lambda b, n: (b, 0, n)),
        ),
        compiler_params=pltpu.CompilerParams(
            dimension_semantics=("parallel", "parallel"),
            vmem_limit_bytes=vmem_limit,
        ),
        cost_estimate=cost,
    )(x, w, b_tile)
    return out


@functools.partial(jax.jit, static_argnames=("compute_dtype",))
def _graspable_scores_xla(seed_features, w2d, bias, *, compute_dtype):
    # Fallback for tiny inputs: let XLA fuse with the producer.
    cdt = jnp.dtype(compute_dtype)
    out = jnp.einsum('oc,bcn->bon', w2d.astype(cdt), seed_features.astype(cdt),
                     preferred_element_type=jnp.float32)
    out = out + bias.astype(jnp.float32).reshape(1, 3, 1)
    return out.astype(seed_features.dtype)


def graspable_net_forward(seed_features, weight, bias, end_points=None, *,
                          compute_dtype=jnp.bfloat16, force_pallas=False,
                          min_pallas_bytes=1 << 20):
    """Pallas implementation of GraspableNet.forward.

    seed_features: (B, C, N)  float32 (or bf16)
    weight:        (3, C, 1)  PyTorch Conv1d weight layout
    bias:          (3,)
    compute_dtype: dtype the streamed input/weight are cast to (bf16 default,
                   f32 accumulation either way; pass jnp.float32 for the
                   bit-exact PyTorch-f32 path).
    Returns end_points with 'objectness_score' (B,2,N) and 'graspness_score' (B,N).
    """
    if end_points is None:
        end_points = {}
    B, C, N = seed_features.shape
    w2d = weight.reshape(3, C)  # squeeze kernel-size-1 dim

    in_bytes = B * C * N * jnp.dtype(seed_features.dtype).itemsize
    if force_pallas or in_bytes >= min_pallas_bytes:
        scores = _graspable_scores_pallas(seed_features, w2d, bias,
                                          compute_dtype=compute_dtype)
    else:
        scores = _graspable_scores_xla(seed_features, w2d, bias,
                                       compute_dtype=compute_dtype)

    end_points['objectness_score'] = scores[:, :2]   # (B, 2, N)
    end_points['graspness_score'] = scores[:, 2]     # (B, N)
    return end_points


if __name__ == "__main__":
    # Small shapes consistent with the module: seed_feature_dim=32.
    # N=300 is deliberately NOT a multiple of 128 to exercise the ragged
    # last-tile path (no host-side pad/slice).
    B, C, N = 2, 32, 300

    key = jax.random.PRNGKey(0)
    kx, kw, kb = jax.random.split(key, 3)
    seed_features = jax.random.normal(kx, (B, C, N), dtype=jnp.float32)
    weight = jax.random.normal(kw, (3, C, 1), dtype=jnp.float32) * 0.1
    bias = jax.random.normal(kb, (3,), dtype=jnp.float32) * 0.1

    ref = jnp.einsum('oc,bcn->bon', weight.reshape(3, C), seed_features) \
        + bias.reshape(1, 3, 1)

    # 1) Pallas path, exact f32 compute.
    ep32 = graspable_net_forward(seed_features, weight, bias, {},
                                 compute_dtype=jnp.float32, force_pallas=True)
    jax.block_until_ready(ep32['objectness_score'])
    jax.block_until_ready(ep32['graspness_score'])
    assert ep32['objectness_score'].shape == (B, 2, N)
    assert ep32['graspness_score'].shape == (B, N)
    assert jnp.allclose(ep32['objectness_score'], ref[:, :2], atol=1e-5)
    assert jnp.allclose(ep32['graspness_score'], ref[:, 2], atol=1e-5)

    # 2) Pallas path, default bf16 streaming with f32 accumulation.
    ep16 = graspable_net_forward(seed_features, weight, bias, {},
                                 force_pallas=True)
    jax.block_until_ready(ep16['objectness_score'])
    assert jnp.allclose(ep16['objectness_score'], ref[:, :2], atol=3e-2)
    assert jnp.allclose(ep16['graspness_score'], ref[:, 2], atol=3e-2)

    # 3) Default dispatch: this input is tiny, so it takes the fused-XLA path.
    ep_xla = graspable_net_forward(seed_features, weight, bias, {},
                                   compute_dtype=jnp.float32)
    jax.block_until_ready(ep_xla['objectness_score'])
    assert jnp.allclose(ep_xla['objectness_score'], ref[:, :2], atol=1e-5)
    assert jnp.allclose(ep_xla['graspness_score'], ref[:, 2], atol=1e-5)

    print("KERNEL_OK")
</pallas_src>

<mosaic_0001>
module attributes {stable_mosaic.version = 11 : i64} {
  func.func @_graspable_kernel(%arg0: i32, %arg1: i32, %arg2: memref<1x32x128xf32, #tpu.memory_space<vmem>>, %arg3: memref<3x32xf32, #tpu.memory_space<vmem>>, %arg4: memref<3x128xf32, #tpu.memory_space<vmem>>, %arg5: memref<1x3x128xf32, #tpu.memory_space<vmem>>) attributes {dimension_semantics = [#tpu.dimension_semantics<parallel>, #tpu.dimension_semantics<parallel>], iteration_bounds = array<i64: 2, 3>, scalar_prefetch = 0 : i64, scratch_operands = 0 : i64, tpu.core_type = #tpu.core_type<tc>, window_params = [{transform_indices = @transform_0, window_bounds = array<i64: 1, 32, 128>}, {pipeline_mode = #tpu.pipeline_mode<synchronous>, transform_indices = @transform_1, window_bounds = array<i64: 3, 32>}, {pipeline_mode = #tpu.pipeline_mode<synchronous>, transform_indices = @transform_2, window_bounds = array<i64: 3, 128>}, {transform_indices = @transform_3, window_bounds = array<i64: 1, 3, 128>}]} {
    %c0 = arith.constant 0 : index
    %c0_0 = arith.constant 0 : index
    %c0_1 = arith.constant 0 : index
    %0 = vector.load %arg2[%c0, %c0_0, %c0_1] : memref<1x32x128xf32, #tpu.memory_space<vmem>>, vector<1x32x128xf32>
    %1 = vector.shape_cast %0 : vector<1x32x128xf32> to vector<32x128xf32>
    %c0_2 = arith.constant 0 : index
    %c0_3 = arith.constant 0 : index
    %2 = vector.load %arg3[%c0_2, %c0_3] : memref<3x32xf32, #tpu.memory_space<vmem>>, vector<3x32xf32>
    %cst = arith.constant dense<0.000000e+00> : vector<3x128xf32>
    %3 = tpu.matmul %2, %1, %cst {dimension_numbers = #tpu.dot_dimension_numbers<[1], [0], [0], [1], [0, 0, 1, 1], [], []>} : vector<3x32xf32>, vector<32x128xf32>, vector<3x128xf32> -> vector<3x128xf32>
    %c0_4 = arith.constant 0 : index
    %c0_5 = arith.constant 0 : index
    %4 = vector.load %arg4[%c0_4, %c0_5] : memref<3x128xf32, #tpu.memory_space<vmem>>, vector<3x128xf32>
    %5 = arith.addf %3, %4 : vector<3x128xf32>
    %c0_6 = arith.constant 0 : index
    %c0_7 = arith.constant 0 : index
    %c0_8 = arith.constant 0 : index
    %6 = vector.load %arg5[%c0_6, %c0_7, %c0_8] : memref<1x3x128xf32, #tpu.memory_space<vmem>>, vector<1x3x128xf32>
    %7 = vector.shape_cast %6 : vector<1x3x128xf32> to vector<3x128xf32>
    %8 = vector.shape_cast %5 : vector<3x128xf32> to vector<1x3x128xf32>
    tpu.vector_store %arg5[%c0_6, %c0_7, %c0_8], %8 {strides = array<i32>} : memref<1x3x128xf32, #tpu.memory_space<vmem>>, vector<1x3x128xf32>,
    return
  }
  func.func @transform_0(%arg0: i32, %arg1: i32) -> (i32, i32, i32) {
    %c0_i32 = arith.constant 0 : i32
    %c0_i32_0 = arith.constant 0 : i32
    return %arg0, %c0_i32, %arg1 : i32, i32, i32
  }
  func.func @transform_1(%arg0: i32, %arg1: i32) -> (i32, i32) {
    %c0_i32 = arith.constant 0 : i32
    %c0_i32_0 = arith.constant 0 : i32
    %c0_i32_1 = arith.constant 0 : i32
    return %c0_i32, %c0_i32_0 : i32, i32
  }
  func.func @transform_2(%arg0: i32, %arg1: i32) -> (i32, i32) {
    %c0_i32 = arith.constant 0 : i32
    %c0_i32_0 = arith.constant 0 : i32
    %c0_i32_1 = arith.constant 0 : i32
    return %c0_i32, %c0_i32_0 : i32, i32
  }
  func.func @transform_3(%arg0: i32, %arg1: i32) -> (i32, i32, i32) {
    %c0_i32 = arith.constant 0 : i32
    %c0_i32_0 = arith.constant 0 : i32
    return %arg0, %c0_i32, %arg1 : i32, i32, i32
  }
}

</mosaic_0001>

<bundles_post_ra>
// kernel: _graspable_scores_pallas.1
= control target key start
LH: loop header
LB: loop body
LE: loop exit
PB: predicated region body
PF: predicated region fallthrough
CT: control target
= control target key end

     0   :  { %8 = vsyncpa [#allocation3], 0  ;;  %s786_s0 = inlined_call_operand.hbm [shape: f32[2,32,300], index: 0, kind: input, shape index: {}]   ;;  %s787_s1 = inlined_call_operand.vmem [shape: f32[3,32], index: 1, kind: input, shape index: {}]   ;;  %s788_s2 = inlined_call_operand.vmem [shape: f32[3,128], index: 2, kind: input, shape index: {}]   ;;  %s789_s3 = inlined_call_operand.vmem [shape: f32[2,3,300], index: 3, kind: output, shape index: {}]  }
   0x1   :  { %10 = vsyncpa [#allocation3 + $0x1], 0  ;;  %s627_s12 = smov 0   ;;  %s629_s13 = smov 0  }
   0x2   :  { %s631_s14 = smov 0   ;;  %s633_s15 = smov 0  }
   0x3   :  { %s635_s16 = smov 0   ;;  %s637_s17 = smov 0  }
   0x4   :  { %s639_s18 = smov 0   ;;  %s641_s19 = smov 0  }
   0x5 LB: > { %s389_s20 = sadd.s32 4294967295, %s598_s19   ;;  %s25_s21 = sadd.s32 1, %s590_s17  ;;  %s598_s19 = sphi %s641_s19, %s16_s19   ;;  %s594_s18 = sphi %s639_s18, %s800_s18   ;;  %s590_s17 = sphi %s637_s17, %s799_s17   ;;  %s586_s16 = sphi %s635_s16, %s798_s16   ;;  %s582_s15 = sphi %s633_s15, %s797_s15   ;;  %s578_s14 = sphi %s631_s14, %s796_s14   ;;  %s574_s13 = sphi %s629_s13, %s795_s13   ;;  %s570_s12 = sphi %s627_s12, %s794_s12  }
   0x6   : > { %p26_p0 = scmp.ge.s32.totalorder %s25_s21, 3  ;;  %s28_s22 = sadd.s32 1, %s594_s18 }
   0x7   : > { %s37_s23 = sadd.s32 1, %s578_s14  ;;  %p44_p1 = scmp.ne.s32.totalorder %s578_s14, %s574_s13 }
   0x8   : > { %s802_s21 = smov (%p26_p0, %s25_s21), 0  ;;  %s804_s22 = smov (!%p26_p0, %s28_s22), %s594_s18 }
   0x9   : > { %s33_s24 = ssub.s32 %s590_s17, %s802_s21  ;;  %p45_p2 = scmp.eq.s32.totalorder %s598_s19, 0 }
   0xa   : > { %p30_p3 = scmp.ge.s32.totalorder %s804_s22, 2  ;;  %p50_p4 = scmp.ne.s32.totalorder %s574_s13, %s570_s12 }
   0xb   : > { %p678_p5 = por %p45_p2, %p44_p1  ;;  %p51_p6 = scmp.eq.s32.totalorder %s389_s20, 0 }
   0xc   : > { %s806_s22 = smov (%p30_p3, %s804_s22), 0  ;;  %p431_p8 = scmp.lt.s32.totalorder %s598_s19, 6 }
   0xd   : > { %p684_p7 = por %p51_p6, %p50_p4  ;;  %s32_s27 = ssub.s32 %s594_s18, %s806_s22 }
   0xe   : > { %s34_s28 = sor.u32 %s33_s24, %s32_s27  ;;  %s150_s29 = sand.u32 1, %s578_s14  }
   0xf   : > { %p35_p9 = scmp.eq.s32.totalorder %s34_s28, 0  ;;  %s393_s30 = sshll.u32 %s150_s29, 5 }
  0x10   : > { %s423_s4 = smul.u32 12, %s594_s18  ;;  %s154_s8 = scalar_lea.vmem [#allocation2], %s393_s30 }
  0x11   : > { %s694_s5 = scalar_select %p35_p9, %s578_s14, %s37_s23  }
  0x12   : > { %s159_s6 = sadd.s32 %s590_s17, %s423_s4  ;;  %s162_s9 = sshll.u32 %s154_s8, 4  ;;  %s702_s9 = int_to_ptr.vmem [resolvable:$true] %s162_s9 }
  0x13   : > { %s394_s7 = sshll.u32 %s159_s6, 7  ;;  %p708_p10 = pnand %p431_p8, %p678_p5 }
  0x14   : > { %s700_s12 = scalar_lea.hbm %s786_s0, %s394_s7  ;;  %s713_s23 = scalar_lea.sflag [#allocation3], %s150_s29 }
  0x15   : > { %s502_s24 = scalar_lea.hbm %s700_s12, 512  ;;  %p504_p13 = pneg %p708_p10 }
  0x16   : > { %p503_p12 = scmp.ne.s32.totalorder %s700_s12, %s502_s24  ;;  %s507_s28 = scalar_lea.hbm %s786_s0, 3072 }
  0x17   : > { %p508_p2 = scmp.lt.u32.totalorder %s700_s12, %s786_s0  ;;  %p509_p3 = scmp.lt.u32.totalorder %s507_s28, %s502_s24 }
  0x18   : > { %p505_p0 = pnand %p504_p13, %p503_p12  ;;  %p511_p5 = scmp.lt.u32.totalorder %s502_s24, %s700_s12 }
  0x19   : > { %p510_p4 = por %p509_p3, %p508_p2 }
  0x1a   : > { %p506_p1 = pneg %p505_p0 }
  0x1b   : > { %p512_p6 = por %p511_p5, %p510_p4 }
  0x1d   : > { %p513_p8 = pnand %p512_p6, %p506_p1 }
  0x1f   : > { %516 = shalt.err (!%p513_p8)
}
  0x20   : > { %s517_s29 = scalar_lea.vmem %s702_s9, 512  ;;  %s600_s6 = smov [#allocation2]  }
  0x21   : > { %p518_p9 = scmp.ne.s32.totalorder %s702_s9, %s517_s29  ;;  %s522_s7 = sshll.u32 %s600_s6, 4  ;;  %s523_s7 = int_to_ptr.vmem [resolvable:$false] %s522_s7 }
  0x22   : > { %s524_s8 = scalar_lea.vmem %s523_s7, 1024  ;;  %p525_p11 = scmp.lt.s32.totalorder %s702_s9, %s523_s7 }
  0x23   : > { %p520_p12 = pnand %p518_p9, %p504_p13  ;;  %p526_p2 = scmp.lt.s32.totalorder %s524_s8, %s517_s29 }
  0x25   : > { %p521_p0 = pneg %p520_p12  ;;  %p527_p3 = por %p526_p2, %p525_p11 }
  0x27   : > { %p528_p4 = pnand %p527_p3, %p521_p0 }
  0x29   : > { %531 = shalt.err (!%p528_p4)
}
  0x2a   : > { %s601_s10 = smov 384   ;;  %s602_s11 = smov 128  }
  0x2b   : > { %s603_s24 = smov 8   ;;  %p170_p13 = scmp.lt.s32.totalorder %s598_s19, 7 }
  0x2c   : > { %430 = dma.hbm_to_vmem [thread:$0]  (!%p708_p10), %s700_s12, 512, %s702_s9, %s713_s23, %s601_s10, %s602_s11, %s603_s24  }
  0x2d   : > { %p793_p1 = scmp.ge.s32.totalorder %s598_s19, 1 }
  0x2f   : > { %p171_p5 = pnand %p793_p1, %p170_p13 }
  0x30   : > { %s176_s27 = sand.u32 (!%p171_p5), 1, %s574_s13  }
  0x31   : > { %174 = sbr.rel (%p171_p5) target bundleno = 282 (0x11a), region = 32  ;;  %s396_s25 = sshll.u32 (!%p171_p5), %s176_s27, 5 }
  0x32   : > { %s177_s28 = scalar_lea.sflag (!%p171_p5), [#allocation3], %s176_s27  ;;  %s180_s30 = scalar_lea.vmem (!%p171_p5), [#allocation2], %s396_s25 }
  0x38   : > { %565 = dma.done.wait (%p684_p7), %s177_s28, 512  }
  0x39   : > { %567 = vsyncadd (%p684_p7), %s177_s28, 4294966784  ;;  %v604_v0 = vmov 0.0|0.0   ;;  %vm605_vm0 = vmmov 0   ;;  %v606_v1 = vmov 0.0   ;;  %v214_v2 = vld [vmem:[%s180_s30] sm:$0xff]  ;;  %v215_v3 = vld [vmem:[%s180_s30 + $0x8] sm:$0xff] }
  0x3a   : > { %417 = vmatprep.subr.bf16.mxu0 %v604_v0  ;;  %414 = vmatprep.mubr.msk.f32.mxu0 %vm605_vm0, %v606_v1  ;;  %v216_v4 = vld [vmem:[%s180_s30 + $0x10] sm:$0xff]  ;;  %v418_v5 = vpack.c.bf16 %v215_v3, %v214_v2  ;;  %v217_v6 = vld [vmem:[%s180_s30 + $0x18] sm:$0xff]  ;;  %v218_v8 = vld [vmem:[%s787_s1] sm:$0x7]  ;;  %vm220_vm1 = vcmask 261120   ;;  %p206_p7 = scmp.lt.s32.totalorder %s586_s16, 1 }
  0x3b   : > { %v421_v7 = vpack.c.bf16 %v217_v6, %v216_v4  ;;  %p208_p10 = scmp.lt.s32.totalorder %s582_s15, 2  ;;  %v219_v9 = vld [vmem:[%s788_s2] sm:$0x7] }
  0x3c   : > { %419 = vmatpush3.bf16.msra.mxu0 %v418_v5  ;;  %s808_s16 = smov (!%p206_p7, %s586_s16), 1 }
  0x3d   : > { %420 = vmatprep.subr.bf16.mxu0 %v604_v0  ;;  %s810_s15 = smov (!%p208_p10, %s582_s15), 2  ;;  %s424_s12 = smul.u32 3, %s808_s16 }
  0x3f   : > { %s211_s20 = sadd.s32 %s424_s12, %s810_s15 }
  0x40   : > { %422 = vmatpush3.bf16.msra.mxu0 %v421_v7  ;;  %s397_s23 = sshll.u32 %s211_s20, 2 }
  0x41   : > { %s213_s8 = scalar_lea.vmem %s789_s3, %s397_s23 }
  0x43   : > { %415 = vmatmul.mubr.msk.f32.vlgmr.msra.gmra.mrb[0].mxu0 %vm220_vm1, %v218_v8 }
 0x116   : > { %v290_v10 = vpop.f32.mrb[0].mxu0 }
 0x117   : > { %v291_v11 = vadd.f32 %v290_v10, %v219_v9  ;;  %v416_v12 = vpop.f32.mrb[1].mxu0 }
 0x119   : > { %294 = vst [vmem:[%s213_s8] sm:$0x7] %v291_v11 }
 0x11a PF: > { %s16_s19 = sadd.s32 1, %s598_s19   ;;  %s794_s12 = smov %s574_s13 }
 0x11b   : > { %p13_p11 = scmp.ge.s32.totalorder %s16_s19, 8   ;;  %s795_s13 = smov %s578_s14 }
 0x11c   : > { %s796_s14 = smov %s694_s5  ;;  %s797_s15 = smov %s590_s17 }
 0x11d   : > { %s798_s16 = smov %s594_s18  ;;  %s799_s17 = smov %s802_s21 }
 0x11e   : > { %s800_s18 = smov %s806_s22  ;;  %15 = sbr.rel (!%p13_p11) target bundleno = 5 (0x5), region = 72 }
 0x125   :  { %322 = vsyncpa [#allocation3], 1 }
 0x126   :  { %324 = vsyncpa [#allocation3 + $0x1], 1 }

</bundles_post_ra>
